<compile_context>
chip_gen: v5e
topology: v5e:2x2
jax: 0.10.0
libtpu: 0.0.40
codegen_flags: <defaults>
</compile_context>

<pallas_src>
import jax
import jax.numpy as jnp
from jax.experimental import pallas as pl
from jax.experimental.pallas import tpu as pltpu

HIDDEN = 128  # fixed by the PyTorch module


def _round_up(x, m):
    return (x + m - 1) // m * m


def _select_tile_b(batch):
    """Adaptive batch tile (static; batch is a compile-time shape)."""
    if batch <= 512:
        return _round_up(batch, 8)                # one near-exact tile (low latency)
    if batch <= 2048:
        return _round_up(pl.cdiv(batch, 2), 16)   # 2 tiles -> both v7x TCs busy
    return 1024                                   # large batch: big tiles, few steps


def _actor_kernel(x_ref, w1_ref, b1_ref, w2_ref, b2_ref, w3_ref, b3_ref, o_ref):
    # x arrives f32 and is cast to bf16 in-register (no wrapper-side copy);
    # matmuls run on the MXU in bf16 with f32 accumulation; bias/ReLU/tanh in f32.
    x = x_ref[...].astype(jnp.bfloat16)
    h1 = jnp.dot(x, w1_ref[...], preferred_element_type=jnp.float32)
    h1 = jnp.maximum(h1 + b1_ref[...], 0.0).astype(jnp.bfloat16)

    h2 = jnp.dot(h1, w2_ref[...], preferred_element_type=jnp.float32)
    h2 = jnp.maximum(h2 + b2_ref[...], 0.0).astype(jnp.bfloat16)

    o = jnp.dot(h2, w3_ref[...], preferred_element_type=jnp.float32) + b3_ref[...]
    o_ref[...] = jnp.tanh(o).astype(o_ref.dtype)  # tanh on EUP, bf16 store


@jax.jit
def actor_forward(x, w1, b1, w2, b2, w3, b3):
    """x: (batch, state_dim) f32; weights bf16 [in, out]; biases f32 (1, out).

    Returns (batch, action_dim) bf16 (upcast outside if the consumer needs f32).
    """
    batch, state_dim = x.shape
    action_dim = w3.shape[1]

    tile_b = _select_tile_b(batch)
    grid = (pl.cdiv(batch, tile_b),)

    flops = 2 * batch * (state_dim * HIDDEN + HIDDEN * HIDDEN + HIDDEN * action_dim)
    bytes_accessed = (
        x.size * x.dtype.itemsize                   # streamed activations in (f32)
        + batch * action_dim * 2                    # bf16 output
        + (w1.size + w2.size + w3.size) * 2         # bf16 weights (resident)
        + (b1.size + b2.size + b3.size) * 4         # f32 biases (resident)
    )
    cost = pl.CostEstimate(
        flops=flops, transcendentals=batch * action_dim, bytes_accessed=bytes_accessed
    )

    return pl.pallas_call(
        _actor_kernel,
        out_shape=jax.ShapeDtypeStruct((batch, action_dim), jnp.bfloat16),
        grid=grid,
        in_specs=[
            pl.BlockSpec((tile_b, state_dim), lambda i: (i, 0)),   # x: streamed
            pl.BlockSpec((state_dim, HIDDEN), lambda i: (0, 0)),   # w1: resident
            pl.BlockSpec((1, HIDDEN), lambda i: (0, 0)),           # b1: resident
            pl.BlockSpec((HIDDEN, HIDDEN), lambda i: (0, 0)),      # w2: resident
            pl.BlockSpec((1, HIDDEN), lambda i: (0, 0)),           # b2: resident
            pl.BlockSpec((HIDDEN, action_dim), lambda i: (0, 0)),  # w3: resident
            pl.BlockSpec((1, action_dim), lambda i: (0, 0)),       # b3: resident
        ],
        out_specs=pl.BlockSpec((tile_b, action_dim), lambda i: (i, 0)),
        compiler_params=pltpu.CompilerParams(
            dimension_semantics=("parallel",),   # shard batch tiles across v7x's 2 TCs
        ),
        cost_estimate=cost,
    )(x, w1, b1, w2, b2, w3, b3)


def init_actor_params(key, state_dim, action_dim):
    """f32 params mimicking PyTorch nn.Linear default init (U[-1/sqrt(fan_in), +])."""
    ks = jax.random.split(key, 6)

    def lin(kw, kb, fan_in, fan_out):
        bound = 1.0 / jnp.sqrt(fan_in)
        w = jax.random.uniform(kw, (fan_in, fan_out), jnp.float32, -bound, bound)
        b = jax.random.uniform(kb, (1, fan_out), jnp.float32, -bound, bound)
        return w, b

    w1, b1 = lin(ks[0], ks[1], state_dim, HIDDEN)
    w2, b2 = lin(ks[2], ks[3], HIDDEN, HIDDEN)
    w3, b3 = lin(ks[4], ks[5], HIDDEN, action_dim)
    return w1, b1, w2, b2, w3, b3


def prepare_actor_params(w1, b1, w2, b2, w3, b3):
    """One-time cast of weights to bf16 (hoisted out of the per-call path)."""
    bf = jnp.bfloat16
    return (w1.astype(bf), b1.astype(jnp.float32),
            w2.astype(bf), b2.astype(jnp.float32),
            w3.astype(bf), b3.astype(jnp.float32))


def actor_reference_f32(x, w1, b1, w2, b2, w3, b3):
    h1 = jnp.maximum(x @ w1 + b1, 0.0)
    h2 = jnp.maximum(h1 @ w2 + b2, 0.0)
    return jnp.tanh(h2 @ w3 + b3)


def actor_reference_bf16(x, w1, b1, w2, b2, w3, b3):
    """Matches the kernel numerics (bf16 matmul operands, f32 accum/elementwise)."""
    bf = jnp.bfloat16
    h1 = jnp.maximum(
        jnp.dot(x.astype(bf), w1.astype(bf), preferred_element_type=jnp.float32) + b1, 0.0)
    h2 = jnp.maximum(
        jnp.dot(h1.astype(bf), w2.astype(bf), preferred_element_type=jnp.float32) + b2, 0.0)
    o = jnp.dot(h2.astype(bf), w3.astype(bf), preferred_element_type=jnp.float32) + b3
    return jnp.tanh(o)


if __name__ == "__main__":
    key = jax.random.PRNGKey(0)
    k_x, k_x2, k_p = jax.random.split(key, 3)

    batch, state_dim, action_dim = 8, 32, 8
    x = jax.random.normal(k_x, (batch, state_dim), jnp.float32)
    params = init_actor_params(k_p, state_dim, action_dim)
    prepared = prepare_actor_params(*params)   # weights bf16, biases f32 (done once)

    out = actor_forward(x, *prepared)
    jax.block_until_ready(out)
    assert out.shape == (batch, action_dim)
    assert out.dtype == jnp.bfloat16
    out_f32 = out.astype(jnp.float32)

    # Tight check vs. a numerics-matched (bf16-operand) reference; tolerance covers
    # the bf16 rounding of the stored tanh output (~4e-3 for values in [-1, 1]).
    ref_bf16 = actor_reference_bf16(x, *params)
    assert jnp.allclose(out_f32, ref_bf16, atol=1e-2, rtol=1e-2)

    # Looser check vs. the pure-f32 reference (bf16 operand quantization).
    ref_f32 = actor_reference_f32(x, *params)
    assert jnp.allclose(out_f32, ref_f32, atol=3e-2, rtol=3e-2)

    # Ragged-batch path: batch not a multiple of the tile -> Pallas partial last
    # block (OOB input rows are row-independent, OOB output writes dropped).
    x2 = jax.random.normal(k_x2, (37, state_dim), jnp.float32)
    out2 = actor_forward(x2, *prepared)
    jax.block_until_ready(out2)
    assert out2.shape == (37, action_dim)
    ref2 = actor_reference_bf16(x2, *params)
    assert jnp.allclose(out2.astype(jnp.float32), ref2, atol=1e-2, rtol=1e-2)

    print("KERNEL_OK")
</pallas_src>

<mosaic_0001>
module attributes {stable_mosaic.version = 11 : i64} {
  func.func @_actor_kernel(%arg0: i32, %arg1: memref<8x32xf32, #tpu.memory_space<vmem>>, %arg2: memref<32x128xbf16, #tpu.memory_space<vmem>>, %arg3: memref<1x128xf32, #tpu.memory_space<vmem>>, %arg4: memref<128x128xbf16, #tpu.memory_space<vmem>>, %arg5: memref<1x128xf32, #tpu.memory_space<vmem>>, %arg6: memref<128x8xbf16, #tpu.memory_space<vmem>>, %arg7: memref<1x8xf32, #tpu.memory_space<vmem>>, %arg8: memref<8x8xbf16, #tpu.memory_space<vmem>>) attributes {dimension_semantics = [#tpu.dimension_semantics<parallel>], iteration_bounds = array<i64: 1>, scalar_prefetch = 0 : i64, scratch_operands = 0 : i64, tpu.core_type = #tpu.core_type<tc>, window_params = [{transform_indices = @transform_0, window_bounds = array<i64: 8, 32>}, {pipeline_mode = #tpu.pipeline_mode<synchronous>, transform_indices = @transform_1, window_bounds = array<i64: 32, 128>}, {pipeline_mode = #tpu.pipeline_mode<synchronous>, transform_indices = @transform_2, window_bounds = array<i64: 1, 128>}, {pipeline_mode = #tpu.pipeline_mode<synchronous>, transform_indices = @transform_3, window_bounds = array<i64: 128, 128>}, {pipeline_mode = #tpu.pipeline_mode<synchronous>, transform_indices = @transform_4, window_bounds = array<i64: 1, 128>}, {pipeline_mode = #tpu.pipeline_mode<synchronous>, transform_indices = @transform_5, window_bounds = array<i64: 128, 8>}, {pipeline_mode = #tpu.pipeline_mode<synchronous>, transform_indices = @transform_6, window_bounds = array<i64: 1, 8>}, {transform_indices = @transform_7, window_bounds = array<i64: 8, 8>}]} {
    %c0 = arith.constant 0 : index
    %c0_0 = arith.constant 0 : index
    %0 = vector.load %arg1[%c0, %c0_0] : memref<8x32xf32, #tpu.memory_space<vmem>>, vector<8x32xf32>
    %1 = arith.truncf %0 : vector<8x32xf32> to vector<8x32xbf16>
    %c0_1 = arith.constant 0 : index
    %c0_2 = arith.constant 0 : index
    %2 = vector.load %arg2[%c0_1, %c0_2] : memref<32x128xbf16, #tpu.memory_space<vmem>>, vector<32x128xbf16>
    %cst = arith.constant dense<0.000000e+00> : vector<8x128xf32>
    %3 = tpu.matmul %1, %2, %cst {dimension_numbers = #tpu.dot_dimension_numbers<[1], [0], [0], [1], [0, 0, 1, 1], [], []>} : vector<8x32xbf16>, vector<32x128xbf16>, vector<8x128xf32> -> vector<8x128xf32>
    %c0_3 = arith.constant 0 : index
    %c0_4 = arith.constant 0 : index
    %4 = vector.load %arg3[%c0_3, %c0_4] : memref<1x128xf32, #tpu.memory_space<vmem>>, vector<1x128xf32>
    %5 = vector.broadcast %4 : vector<1x128xf32> to vector<8x128xf32>
    %6 = arith.addf %3, %5 : vector<8x128xf32>
    %cst_5 = arith.constant 0.000000e+00 : f32
    %7 = vector.broadcast %cst_5 : f32 to vector<8x128xf32>
    %8 = arith.maximumf %6, %7 : vector<8x128xf32>
    %9 = arith.truncf %8 : vector<8x128xf32> to vector<8x128xbf16>
    %c0_6 = arith.constant 0 : index
    %c0_7 = arith.constant 0 : index
    %10 = vector.load %arg4[%c0_6, %c0_7] : memref<128x128xbf16, #tpu.memory_space<vmem>>, vector<128x128xbf16>
    %cst_8 = arith.constant dense<0.000000e+00> : vector<8x128xf32>
    %11 = tpu.matmul %9, %10, %cst_8 {dimension_numbers = #tpu.dot_dimension_numbers<[1], [0], [0], [1], [0, 0, 1, 1], [], []>} : vector<8x128xbf16>, vector<128x128xbf16>, vector<8x128xf32> -> vector<8x128xf32>
    %c0_9 = arith.constant 0 : index
    %c0_10 = arith.constant 0 : index
    %12 = vector.load %arg5[%c0_9, %c0_10] : memref<1x128xf32, #tpu.memory_space<vmem>>, vector<1x128xf32>
    %13 = vector.broadcast %12 : vector<1x128xf32> to vector<8x128xf32>
    %14 = arith.addf %11, %13 : vector<8x128xf32>
    %cst_11 = arith.constant 0.000000e+00 : f32
    %15 = vector.broadcast %cst_11 : f32 to vector<8x128xf32>
    %16 = arith.maximumf %14, %15 : vector<8x128xf32>
    %17 = arith.truncf %16 : vector<8x128xf32> to vector<8x128xbf16>
    %c0_12 = arith.constant 0 : index
    %c0_13 = arith.constant 0 : index
    %18 = vector.load %arg6[%c0_12, %c0_13] : memref<128x8xbf16, #tpu.memory_space<vmem>>, vector<128x8xbf16>
    %cst_14 = arith.constant dense<0.000000e+00> : vector<8x8xf32>
    %19 = tpu.matmul %17, %18, %cst_14 {dimension_numbers = #tpu.dot_dimension_numbers<[1], [0], [0], [1], [0, 0, 1, 1], [], []>} : vector<8x128xbf16>, vector<128x8xbf16>, vector<8x8xf32> -> vector<8x8xf32>
    %c0_15 = arith.constant 0 : index
    %c0_16 = arith.constant 0 : index
    %20 = vector.load %arg7[%c0_15, %c0_16] : memref<1x8xf32, #tpu.memory_space<vmem>>, vector<1x8xf32>
    %21 = vector.broadcast %20 : vector<1x8xf32> to vector<8x8xf32>
    %22 = arith.addf %19, %21 : vector<8x8xf32>
    %23 = math.tanh %22 : vector<8x8xf32>
    %24 = arith.truncf %23 : vector<8x8xf32> to vector<8x8xbf16>
    %c0_17 = arith.constant 0 : index
    %c0_18 = arith.constant 0 : index
    %25 = vector.load %arg8[%c0_17, %c0_18] : memref<8x8xbf16, #tpu.memory_space<vmem>>, vector<8x8xbf16>
    tpu.vector_store %arg8[%c0_17, %c0_18], %24 {strides = array<i32>} : memref<8x8xbf16, #tpu.memory_space<vmem>>, vector<8x8xbf16>,
    return
  }
  func.func @transform_0(%arg0: i32) -> (i32, i32) {
    %c0_i32 = arith.constant 0 : i32
    %c0_i32_0 = arith.constant 0 : i32
    return %arg0, %c0_i32 : i32, i32
  }
  func.func @transform_1(%arg0: i32) -> (i32, i32) {
    %c0_i32 = arith.constant 0 : i32
    %c0_i32_0 = arith.constant 0 : i32
    %c0_i32_1 = arith.constant 0 : i32
    return %c0_i32, %c0_i32_0 : i32, i32
  }
  func.func @transform_2(%arg0: i32) -> (i32, i32) {
    %c0_i32 = arith.constant 0 : i32
    %c0_i32_0 = arith.constant 0 : i32
    %c0_i32_1 = arith.constant 0 : i32
    return %c0_i32, %c0_i32_0 : i32, i32
  }
  func.func @transform_3(%arg0: i32) -> (i32, i32) {
    %c0_i32 = arith.constant 0 : i32
    %c0_i32_0 = arith.constant 0 : i32
    %c0_i32_1 = arith.constant 0 : i32
    return %c0_i32, %c0_i32_0 : i32, i32
  }
  func.func @transform_4(%arg0: i32) -> (i32, i32) {
    %c0_i32 = arith.constant 0 : i32
    %c0_i32_0 = arith.constant 0 : i32
    %c0_i32_1 = arith.constant 0 : i32
    return %c0_i32, %c0_i32_0 : i32, i32
  }
  func.func @transform_5(%arg0: i32) -> (i32, i32) {
    %c0_i32 = arith.constant 0 : i32
    %c0_i32_0 = arith.constant 0 : i32
    %c0_i32_1 = arith.constant 0 : i32
    return %c0_i32, %c0_i32_0 : i32, i32
  }
  func.func @transform_6(%arg0: i32) -> (i32, i32) {
    %c0_i32 = arith.constant 0 : i32
    %c0_i32_0 = arith.constant 0 : i32
    %c0_i32_1 = arith.constant 0 : i32
    return %c0_i32, %c0_i32_0 : i32, i32
  }
  func.func @transform_7(%arg0: i32) -> (i32, i32) {
    %c0_i32 = arith.constant 0 : i32
    %c0_i32_0 = arith.constant 0 : i32
    return %arg0, %c0_i32 : i32, i32
  }
}

</mosaic_0001>

<bundles_post_ra>
// kernel: actor_forward.1
= control target key start
LH: loop header
LB: loop body
LE: loop exit
PB: predicated region body
PF: predicated region fallthrough
CT: control target
= control target key end

     0   :  { %12 = vsyncpa [#allocation3], 0  ;;  %s575_s0 = inlined_call_operand.hbm [shape: f32[8,32], index: 0, kind: input, shape index: {}]   ;;  %s576_s1 = inlined_call_operand.hbm [shape: bf16[32,128], index: 1, kind: input, shape index: {}]   ;;  %s577_s2 = inlined_call_operand.vmem [shape: f32[1,128], index: 2, kind: input, shape index: {}]   ;;  %s578_s3 = inlined_call_operand.vmem [shape: bf16[128,128], index: 3, kind: input, shape index: {}]   ;;  %s579_s4 = inlined_call_operand.vmem [shape: f32[1,128], index: 4, kind: input, shape index: {}]   ;;  %s580_s5 = inlined_call_operand.vmem [shape: bf16[128,8], index: 5, kind: input, shape index: {}]   ;;  %s581_s6 = inlined_call_operand.vmem [shape: f32[1,8], index: 6, kind: input, shape index: {}]   ;;  %s582_s7 = inlined_call_operand.hbm [shape: bf16[8,8], index: 7, kind: output, shape index: {}]  }
   0x1   :  { %13 = vsyncpa [#allocation6], 0 }
   0x2   :  { %14 = vsyncpa [#allocation4], 0  ;;  %s20_s26 = sshll.u32 %s575_s0, 4  ;;  %s464_s27 = smov [#allocation2]   ;;  %s21_s26 = int_to_ptr.hbm [resolvable:$true] %s20_s26 }
   0x3   :  { %s22_s28 = sshll.u32 %s464_s27, 4  ;;  %s30_s8 = sshll.u32 %s576_s1, 4  ;;  %s23_s28 = int_to_ptr.vmem [resolvable:$true] %s22_s28  ;;  %s31_s8 = int_to_ptr.hbm [resolvable:$true] %s30_s8 }
   0x4   :  { %25 = dma.hbm_to_vmem [thread:$0]  %s21_s26, 128, %s23_s28, [#allocation3]  }
   0x5   :  { %s465_s9 = smov [#allocation5]   ;;  %s466_s11 = smov 64  }
   0x6   :  { %s32_s10 = sshll.u32 %s465_s9, 4  ;;  %s467_s12 = smov 4   ;;  %s33_s10 = int_to_ptr.vmem [resolvable:$true] %s32_s10 }
   0x7   :  { %38 = dma.hbm_to_vmem [thread:$0]  %s31_s8, 256, %s33_s10, [#allocation6], %s466_s11, %s466_s11, %s467_s12  }
   0x8   :  { %458 = dma.done.wait [#allocation3], 128  }
   0x9   :  { %459 = vsyncadd [#allocation3], 4294967168 }
   0xa   :  { %460 = dma.done.wait [#allocation6], 256  }
   0xb   :  { %461 = vsyncadd [#allocation6], 4294967040  ;;  %v359_v0 = vld [vmem:[#allocation5 + $0x8] sm:$0xff]  ;;  %v367_v1 = vld [vmem:[%s578_s3 + $0x38] sm:$0xff]  ;;  %vm80_vm0 = vcmask 261120   ;;  %s468_s22 = smov [#allocation7]  }
   0xc   :  { %90 = vmatpush.bf16.msra.mxu0 %v359_v0  ;;  %v358_v2 = vld [vmem:[#allocation5] sm:$0xff]  ;;  %v58_v3 = vld [vmem:[#allocation2] sm:$0xff]  ;;  %167 = vmatpush.bf16.msra.mxu1 %v367_v1  ;;  %v366_v4 = vld [vmem:[%s578_s3 + $0x30] sm:$0xff]  ;;  %s274_s25 = sshll.u32 %s582_s7, 4  ;;  %vm265_vm1 = vcmask 60416   ;;  %s275_s25 = int_to_ptr.hbm [resolvable:$true] %s274_s25 }
   0xd   :  { %v59_v5 = vpack.c.bf16 %v58_v3, %v58_v3  ;;  %v365_v6 = vld [vmem:[%s578_s3 + $0x28] sm:$0xff]  ;;  %v364_v7 = vld [vmem:[%s578_s3 + $0x20] sm:$0xff]  ;;  %v363_v8 = vld [vmem:[%s578_s3 + $0x18] sm:$0xff] }
   0xe   :  { %v362_v9 = vld [vmem:[%s578_s3 + $0x10] sm:$0xff]  ;;  %v361_v10 = vld [vmem:[%s578_s3 + $0x8] sm:$0xff]  ;;  %v360_v11 = vld [vmem:[%s578_s3] sm:$0xff] }
   0xf   :  { %v375_v12 = vld [vmem:[%s580_s5 + $0x38] sm:$0xff]  ;;  %v374_v13 = vld [vmem:[%s580_s5 + $0x30] sm:$0xff]  ;;  %v373_v14 = vld [vmem:[%s580_s5 + $0x28] sm:$0xff] }
  0x10   :  { %91 = vmatpush.bf16.msra.mxu0 %v358_v2  ;;  %168 = vmatpush.bf16.msra.mxu1 %v366_v4  ;;  %v372_v15 = vld [vmem:[%s580_s5 + $0x20] sm:$0xff]  ;;  %v371_v16 = vld [vmem:[%s580_s5 + $0x18] sm:$0xff]  ;;  %v370_v17 = vld [vmem:[%s580_s5 + $0x10] sm:$0xff] }
  0x11   :  { %250 = vmatpush.bf16.msra.mxu2 %v375_v12  ;;  %v381_v18 = vld [vmem:[%s577_s2] ss:$0 sm:$0xff]  ;;  %v369_v24 = vld [vmem:[%s580_s5 + $0x8] sm:$0xff] }
  0x12   :  { %v368_v25 = vld [vmem:[%s580_s5] sm:$0xff]  ;;  %s272_s5 = sshll.u32 %s468_s22, 4  ;;  %s273_s5 = int_to_ptr.vmem [resolvable:$true] %s272_s5 }
  0x13   :  { %293 = vmatmul.msk.bf16.vlgmr.msra.gmra.mxu0 %vm80_vm0, %v59_v5  ;;  %v382_v26 = vld [vmem:[%s579_s4] ss:$0 sm:$0xff] }
  0x14   :  { %169 = vmatpush.bf16.msra.mxu1 %v365_v6  ;;  %v383_v32 = vld [vmem:[%s581_s6] ss:$0 sm:$0xff] }
  0x15   :  { %251 = vmatpush.bf16.msra.mxu2 %v374_v13 }
  0x18   :  { %170 = vmatpush.bf16.msra.mxu1 %v364_v7 }
  0x19   :  { %252 = vmatpush.bf16.msra.mxu2 %v373_v14 }
  0x1c   :  { %171 = vmatpush.bf16.msra.mxu1 %v363_v8 }
  0x1d   :  { %253 = vmatpush.bf16.msra.mxu2 %v372_v15 }
  0x20   :  { %172 = vmatpush.bf16.msra.mxu1 %v362_v9 }
  0x21   :  { %254 = vmatpush.bf16.msra.mxu2 %v371_v16 }
  0x24   :  { %173 = vmatpush.bf16.msra.mxu1 %v361_v10 }
  0x25   :  { %255 = vmatpush.bf16.msra.mxu2 %v370_v17 }
  0x28   :  { %174 = vmatpush.bf16.msra.mxu1 %v360_v11 }
  0x29   :  { %256 = vmatpush.bf16.msra.mxu2 %v369_v24 }
  0x2d   :  { %257 = vmatpush.bf16.msra.mxu2 %v368_v25 }
  0x90   :  { %v93_v19 = vpop.f32.mrf.mxu0 }
  0x91   :  { %v94_v20 = vadd.f32 %v381_v18, %v93_v19 }
  0x93   :  { %v97_v21 = vmax.f32 %v94_v20, 0.0 }
  0x95   :  { %v98_v22 = vpack.c.bf16 %v97_v21, %v97_v21 }
  0x97   :  { %175 = vmatmul.bf16.vlgmr.msra.gmra.mxu1 %v98_v22 }
  0x98   :  { %v95_v23 = vpop.f32.mrf.mxu0 }
 0x114   :  { %v176_v27 = vpop.f32.mrf.mxu1 }
 0x115   :  { %v177_v28 = vadd.f32 %v382_v26, %v176_v27 }
 0x117   :  { %v180_v29 = vmax.f32 %v177_v28, 0.0 }
 0x119   :  { %v181_v30 = vpack.c.bf16 %v180_v29, %v180_v29 }
 0x11b   :  { %258 = vmatmul.bf16.vlgmr.msra.gmra.mxu2 %v181_v30 }
 0x11c   :  { %v178_v31 = vpop.f32.mrf.mxu1 }
 0x19e   :  { %v259_v33 = vpop.f32.mrf.mxu2 }
 0x19f   :  { %v260_v34 = vadd.f32 %v383_v32, %v259_v33 }
 0x1a1   :  { %384 = vtanh.f32 %v260_v34 }
 0x1a6   :  { %v261_v35 = vpop.f32.mrf.mxu2 }
 0x1a7   :  { %v385_v36 = vpop.eup %384 }
 0x1a8   :  { %v264_v37 = vpack.c.bf16 %v385_v36, %v385_v36 }
 0x1aa   :  { %266 = vst.msk [vmem:[#allocation7] sm:$0xf] %vm265_vm1, %v264_v37 }
 0x1ab   :  { %277 = dma.vmem_to_hbm [thread:$0]  %s273_s5, 64, %s275_s25, [#allocation4]  }
 0x1ac   :  { %462 = dma.done.wait [#allocation4], 64  }
 0x1ad   :  { %463 = vsyncadd [#allocation4], 4294967232 }
 0x1ae   :  { %282 = vsyncpa [#allocation3], 1 }
 0x1af   :  { %283 = vsyncpa [#allocation6], 1 }
 0x1b0   :  { %284 = vsyncpa [#allocation4], 1 }

</bundles_post_ra>
